<compile_context>
chip_gen: v7x
topology: tpu7x:2x2x1
jax: 0.10.0
libtpu: 0.0.40
codegen_flags: <defaults>
</compile_context>

<pallas_src>
import functools
import math

import jax
import jax.numpy as jnp
from jax.experimental import pallas as pl
from jax.experimental.pallas import tpu as pltpu

# --- Config (mirrors the PyTorch Config class) -------------------------------
SCALE = 32.0
MARGIN = 0.4


def _round_up(x, m):
    return ((x + m - 1) // m) * m


def _arcface_kernel(x_ref, wt_ref, labels_ref, out_ref, *, margin, scale):
    # x_ref:      [TM, D]  f32   (raw embeddings tile)
    # wt_ref:     [D, TN]  bf16  (pre-normalized, transposed weight tile)
    # labels_ref: [TM, 1]  int32
    # out_ref:    [TM, TN] f32
    x = x_ref[...].astype(jnp.float32)

    # F.normalize(x, p=2, dim=1) == x / max(||x||, 1e-12)
    #   implemented as x * rsqrt(max(sum(x^2), 1e-24))  (rsqrt -> EUP slot)
    sumsq = jnp.sum(x * x, axis=1, keepdims=True)
    x_norm = x * jax.lax.rsqrt(jnp.maximum(sumsq, 1e-24))

    # cosine logits on the MXU: bf16 inputs, f32 accumulation
    cos_theta = jnp.dot(x_norm.astype(jnp.bfloat16), wt_ref[...],
                        preferred_element_type=jnp.float32)        # [TM, TN]
    cos_theta = jnp.clip(cos_theta, -1.0 + 1e-6, 1.0 - 1e-6)

    # cos(theta + margin) via trig identity (exact for theta = acos(c))
    sin_theta = jnp.sqrt(1.0 - cos_theta * cos_theta)
    cos_theta_margin = (cos_theta * math.cos(margin)
                        - sin_theta * math.sin(margin))

    # global class ids for this C tile (iota offset by the C-block index)
    tn = out_ref.shape[1]
    col0 = pl.program_id(1) * tn
    class_ids = jax.lax.broadcasted_iota(jnp.int32, cos_theta.shape, 1) + col0

    labels = labels_ref[...]                                       # [TM, 1]
    logits = scale * jnp.where(class_ids == labels, cos_theta_margin, cos_theta)
    out_ref[...] = logits.astype(out_ref.dtype)


def arcface_forward(embeddings, weight, labels, *, margin=MARGIN, scale=SCALE,
                    block_b=128, block_c=256):
    """embeddings: [B, D] f32, weight: [C, D] f32, labels: [B] int -> [B, C] f32."""
    B, D = embeddings.shape
    C, D2 = weight.shape
    assert D == D2

    # --- wrapper-side prep (done once, not per grid step) ---------------------
    # Normalize W rows (F.normalize semantics), transpose to [D, C], cast bf16.
    w = weight.astype(jnp.float32)
    w_sumsq = jnp.sum(w * w, axis=1, keepdims=True)
    w_norm = w * jax.lax.rsqrt(jnp.maximum(w_sumsq, 1e-24))
    w_t = w_norm.T.astype(jnp.bfloat16)                            # [D, C]

    # Tile sizes (lane-dense output; shrink for tiny test shapes).
    tm = min(block_b, _round_up(B, 8))
    tn = min(block_c, _round_up(C, 128))
    b_pad = _round_up(B, tm)
    c_pad = _round_up(C, tn)

    x = embeddings.astype(jnp.float32)
    if b_pad != B:
        x = jnp.pad(x, ((0, b_pad - B), (0, 0)))
    if c_pad != C:
        w_t = jnp.pad(w_t, ((0, 0), (0, c_pad - C)))

    labels_col = labels.astype(jnp.int32).reshape(B, 1)
    if b_pad != B:
        # padded rows get label -1 so they never match any class id
        labels_col = jnp.pad(labels_col, ((0, b_pad - B), (0, 0)),
                             constant_values=-1)

    grid = (b_pad // tm, c_pad // tn)
    kernel = functools.partial(_arcface_kernel, margin=margin, scale=scale)

    out = pl.pallas_call(
        kernel,
        out_shape=jax.ShapeDtypeStruct((b_pad, c_pad), jnp.float32),
        grid=grid,
        in_specs=[
            pl.BlockSpec((tm, D), lambda i, j: (i, 0)),    # embeddings tile
            pl.BlockSpec((D, tn), lambda i, j: (0, j)),    # W^T tile (bf16)
            pl.BlockSpec((tm, 1), lambda i, j: (i, 0)),    # labels column
        ],
        out_specs=pl.BlockSpec((tm, tn), lambda i, j: (i, j)),
        compiler_params=pltpu.CompilerParams(
            dimension_semantics=("parallel", "parallel"),
            vmem_limit_bytes=48 * 1024 * 1024),
    )(x, w_t, labels_col)

    return out[:B, :C]


def _reference(embeddings, weight, labels, *, margin=MARGIN, scale=SCALE):
    """Pure-JAX reference mirroring the PyTorch forward.

    Uses the same bf16 MXU contraction precision as the kernel so the
    comparison isolates logic errors rather than dtype rounding.
    """
    w_norm = weight / jnp.maximum(
        jnp.linalg.norm(weight, axis=1, keepdims=True), 1e-12)
    x_norm = embeddings / jnp.maximum(
        jnp.linalg.norm(embeddings, axis=1, keepdims=True), 1e-12)
    cos_theta = jnp.dot(x_norm.astype(jnp.bfloat16),
                        w_norm.T.astype(jnp.bfloat16),
                        preferred_element_type=jnp.float32)
    cos_theta = jnp.clip(cos_theta, -1.0 + 1e-6, 1.0 - 1e-6)
    theta = jnp.arccos(cos_theta)
    one_hot = jax.nn.one_hot(labels, weight.shape[0], dtype=cos_theta.dtype)
    cos_theta_margin = jnp.cos(theta + margin * one_hot)
    return scale * (one_hot * cos_theta_margin + (1.0 - one_hot) * cos_theta)


if __name__ == "__main__":
    # Small deterministic shapes; C > 128 and forced small blocks so the
    # multi-tile path (B and C grid axes, iota offset, padding/slicing) runs.
    B, D, C = 16, 64, 300
    key = jax.random.PRNGKey(0)
    k_emb, k_w, k_lab = jax.random.split(key, 3)

    embeddings = jax.random.normal(k_emb, (B, D), dtype=jnp.float32)
    # xavier_normal_ for W of shape [out_features, in_features]
    xavier_std = math.sqrt(2.0 / (D + C))
    W = xavier_std * jax.random.normal(k_w, (C, D), dtype=jnp.float32)
    labels = jax.random.randint(k_lab, (B,), 0, C, dtype=jnp.int32)

    ref = _reference(embeddings, W, labels)

    # Multi-tile path (grid = (2, 3) with these blocks).
    logits_tiled = arcface_forward(embeddings, W, labels,
                                   block_b=8, block_c=128)
    jax.block_until_ready(logits_tiled)
    assert logits_tiled.shape == (B, C)
    err = float(jnp.max(jnp.abs(logits_tiled - ref)))
    assert jnp.allclose(logits_tiled, ref, atol=2e-2, rtol=1e-3), err

    # Default (production) tile sizes.
    logits = arcface_forward(embeddings, W, labels)
    jax.block_until_ready(logits)
    assert logits.shape == (B, C)
    err = float(jnp.max(jnp.abs(logits - ref)))
    assert jnp.allclose(logits, ref, atol=2e-2, rtol=1e-3), err

    print("KERNEL_OK")
</pallas_src>

<mosaic_0001>
module attributes {stable_mosaic.version = 11 : i64} {
  func.func @_arcface_kernel(%arg0: i32, %arg1: i32, %arg2: memref<8x64xf32, #tpu.memory_space<vmem>>, %arg3: memref<64x128xbf16, #tpu.memory_space<vmem>>, %arg4: memref<8x1xi32, #tpu.memory_space<vmem>>, %arg5: memref<8x128xf32, #tpu.memory_space<vmem>>) attributes {dimension_semantics = [#tpu.dimension_semantics<parallel>, #tpu.dimension_semantics<parallel>], iteration_bounds = array<i64: 2, 3>, scalar_prefetch = 0 : i64, scratch_operands = 0 : i64, tpu.core_type = #tpu.core_type<tc>, window_params = [{transform_indices = @transform_0, window_bounds = array<i64: 8, 64>}, {transform_indices = @transform_1, window_bounds = array<i64: 64, 128>}, {transform_indices = @transform_2, window_bounds = array<i64: 8, 1>}, {transform_indices = @transform_3, window_bounds = array<i64: 8, 128>}]} {
    %c0 = arith.constant 0 : index
    %c0_0 = arith.constant 0 : index
    %0 = vector.load %arg2[%c0, %c0_0] : memref<8x64xf32, #tpu.memory_space<vmem>>, vector<8x64xf32>
    %1 = arith.mulf %0, %0 : vector<8x64xf32>
    %cst = arith.constant dense<0.000000e+00> : vector<8xf32>
    %2 = vector.multi_reduction <add>, %1, %cst [1] : vector<8x64xf32> to vector<8xf32>
    %3 = vector.shape_cast %2 : vector<8xf32> to vector<8x1xf32>
    %cst_1 = arith.constant 1.000000e-24 : f32
    %4 = vector.broadcast %cst_1 : f32 to vector<8x1xf32>
    %5 = arith.maximumf %3, %4 : vector<8x1xf32>
    %6 = math.rsqrt %5 : vector<8x1xf32>
    %7 = vector.broadcast %6 : vector<8x1xf32> to vector<8x64xf32>
    %8 = arith.mulf %0, %7 : vector<8x64xf32>
    %9 = arith.truncf %8 : vector<8x64xf32> to vector<8x64xbf16>
    %c0_2 = arith.constant 0 : index
    %c0_3 = arith.constant 0 : index
    %10 = vector.load %arg3[%c0_2, %c0_3] : memref<64x128xbf16, #tpu.memory_space<vmem>>, vector<64x128xbf16>
    %cst_4 = arith.constant dense<0.000000e+00> : vector<8x128xf32>
    %11 = tpu.matmul %9, %10, %cst_4 {dimension_numbers = #tpu.dot_dimension_numbers<[1], [0], [0], [1], [0, 0, 1, 1], [], []>} : vector<8x64xbf16>, vector<64x128xbf16>, vector<8x128xf32> -> vector<8x128xf32>
    %cst_5 = arith.constant -0.999998986 : f32
    %cst_6 = arith.constant 0.999998986 : f32
    %12 = vector.broadcast %cst_5 : f32 to vector<8x128xf32>
    %13 = arith.maximumf %12, %11 : vector<8x128xf32>
    %14 = vector.broadcast %cst_6 : f32 to vector<8x128xf32>
    %15 = arith.minimumf %14, %13 : vector<8x128xf32>
    %16 = arith.mulf %15, %15 : vector<8x128xf32>
    %cst_7 = arith.constant 1.000000e+00 : f32
    %17 = vector.broadcast %cst_7 : f32 to vector<8x128xf32>
    %18 = arith.subf %17, %16 : vector<8x128xf32>
    %19 = math.sqrt %18 : vector<8x128xf32>
    %cst_8 = arith.constant 0.921060979 : f32
    %20 = vector.broadcast %cst_8 : f32 to vector<8x128xf32>
    %21 = arith.mulf %15, %20 : vector<8x128xf32>
    %cst_9 = arith.constant 0.389418334 : f32
    %22 = vector.broadcast %cst_9 : f32 to vector<8x128xf32>
    %23 = arith.mulf %19, %22 : vector<8x128xf32>
    %24 = arith.subf %21, %23 : vector<8x128xf32>
    %c128_i32 = arith.constant 128 : i32
    %25 = arith.muli %arg1, %c128_i32 : i32
    %26 = tpu.iota {dimensions = array<i32: 1>} : vector<8x128xi32>
    %27 = vector.broadcast %25 : i32 to vector<8x128xi32>
    %28 = arith.addi %26, %27 : vector<8x128xi32>
    %c0_10 = arith.constant 0 : index
    %c0_11 = arith.constant 0 : index
    %29 = vector.load %arg4[%c0_10, %c0_11] : memref<8x1xi32, #tpu.memory_space<vmem>>, vector<8x1xi32>
    %30 = vector.broadcast %29 : vector<8x1xi32> to vector<8x128xi32>
    %31 = arith.cmpi eq, %28, %30 : vector<8x128xi32>
    %32 = arith.select %31, %24, %15 : vector<8x128xi1>, vector<8x128xf32>
    %cst_12 = arith.constant 3.200000e+01 : f32
    %33 = vector.broadcast %cst_12 : f32 to vector<8x128xf32>
    %34 = arith.mulf %33, %32 : vector<8x128xf32>
    %c0_13 = arith.constant 0 : index
    %c0_14 = arith.constant 0 : index
    %35 = vector.load %arg5[%c0_13, %c0_14] : memref<8x128xf32, #tpu.memory_space<vmem>>, vector<8x128xf32>
    tpu.vector_store %arg5[%c0_13, %c0_14], %34 {strides = array<i32>} : memref<8x128xf32, #tpu.memory_space<vmem>>, vector<8x128xf32>,
    return
  }
  func.func @transform_0(%arg0: i32, %arg1: i32) -> (i32, i32) {
    %c0_i32 = arith.constant 0 : i32
    %c0_i32_0 = arith.constant 0 : i32
    return %arg0, %c0_i32 : i32, i32
  }
  func.func @transform_1(%arg0: i32, %arg1: i32) -> (i32, i32) {
    %c0_i32 = arith.constant 0 : i32
    %c0_i32_0 = arith.constant 0 : i32
    return %c0_i32, %arg1 : i32, i32
  }
  func.func @transform_2(%arg0: i32, %arg1: i32) -> (i32, i32) {
    %c0_i32 = arith.constant 0 : i32
    %c0_i32_0 = arith.constant 0 : i32
    return %arg0, %c0_i32 : i32, i32
  }
  func.func @transform_3(%arg0: i32, %arg1: i32) -> (i32, i32) {
    %c0_i32 = arith.constant 0 : i32
    return %arg0, %arg1 : i32, i32
  }
}

</mosaic_0001>

<bundles_post_ra>
// kernel: tpu_custom_call.1
= control target key start
LH: loop header
LB: loop body
LE: loop exit
PB: predicated region body
PF: predicated region fallthrough
CT: control target
= control target key end

     0   :  { %8 = vsyncpa [#allocation3], 0  ;;  %s1039_s0 = inlined_call_operand.vmem [shape: f32[16,64], index: 0, kind: input, shape index: {}]   ;;  %s1040_s1 = inlined_call_operand.hbm [shape: bf16[64,384], index: 1, kind: input, shape index: {}]   ;;  %s1041_s2 = inlined_call_operand.vmem [shape: s32[16,1], index: 2, kind: input, shape index: {}]   ;;  %s1042_s3 = inlined_call_operand.hbm [shape: f32[16,384], index: 3, kind: output, shape index: {}]  }
   0x1   :  { %10 = vsyncpa [#allocation3 + $0x1], 0 }
   0x2   :  { %11 = vsyncpa [#allocation4], 0 }
   0x3   :  { %13 = vsyncpa [#allocation4 + $0x1], 0  ;;  %s811_s12 = smov 0   ;;  %s813_s13 = smov 0  }
   0x4   :  { %s815_s14 = smov 0   ;;  %s817_s15 = smov 0  }
   0x5   :  { %s819_s16 = smov 0   ;;  %s821_s17 = smov 0  }
   0x6   :  { %s823_s18 = smov 0   ;;  %s825_s19 = smov 0  }
   0x7   :  { %s827_s20 = smov 0   ;;  %s829_s21 = smov 0  }
   0x8   :  { %s831_s22 = smov 0  }
   0x9 LB: > { %s472_s23 = sadd.s32 4294967295, %s781_s22   ;;  %s473_s24 = sadd.s32 4294967294, %s781_s22   ;;  %s781_s22 = sphi %s831_s22, %s19_s22   ;;  %s777_s21 = sphi %s829_s21, %s1063_s21   ;;  %s773_s20 = sphi %s827_s20, %s1062_s20   ;;  %s769_s19 = sphi %s825_s19, %s1061_s19   ;;  %s765_s18 = sphi %s823_s18, %s1060_s18   ;;  %s761_s17 = sphi %s821_s17, %s1059_s17   ;;  %s757_s16 = sphi %s819_s16, %s1058_s16   ;;  %s753_s15 = sphi %s817_s15, %s1057_s15   ;;  %s749_s14 = sphi %s815_s14, %s1056_s14   ;;  %s745_s13 = sphi %s813_s13, %s1055_s13   ;;  %s741_s12 = sphi %s811_s12, %s1054_s12  }
   0xa   : > { %s28_s25 = sadd.s32 1, %s773_s20  ;;  %s31_s26 = sadd.s32 1, %s777_s21 }
   0xb   : > { %p29_p0 = scmp.ge.s32.totalorder %s28_s25, 3  ;;  %s64_s27 = sadd.s32 1, %s761_s17 }
   0xc   : > { %p71_p1 = scmp.ne.s32.totalorder %s761_s17, %s757_s16  ;;  %p72_p2 = scmp.eq.s32.totalorder %s781_s22, 0 }
   0xd   : > { %s1065_s25 = smov (%p29_p0, %s28_s25), 0  ;;  %s1067_s26 = smov (!%p29_p0, %s31_s26), %s777_s21 }
   0xe   : > { %s61_s28 = ssub.s32 %s773_s20, %s1065_s25  ;;  %p877_p3 = por %p72_p2, %p71_p1 }
   0xf   : > { %p33_p4 = scmp.ge.s32.totalorder %s1067_s26, 2  ;;  %p62_p5 = scmp.eq.s32.totalorder %s61_s28, 0 }
  0x10   : > { %p77_p6 = scmp.ne.s32.totalorder %s757_s16, %s753_s15  ;;  %p78_p7 = scmp.eq.s32.totalorder %s472_s23, 0 }
  0x11   : > { %s1069_s26 = smov (%p33_p4, %s1067_s26), 0  ;;  %s118_s7 = sadd.s32 1, %s749_s14 }
  0x12   : > { %1046 = sst [smem:[#allocation8_spill]] %s1069_s26  ;;  %p887_p8 = por %p78_p7, %p77_p6 }
  0x13   : > { %s885_s30 = scalar_select %p62_p5, %s761_s17, %s64_s27  }
  0x14   : > { %s113_s5 = ssub.s32 %s777_s21, %s1069_s26  ;;  %p128_p10 = scmp.ne.s32.totalorder %s749_s14, %s745_s13 }
  0x15   : > { %s115_s6 = sor.u32 %s113_s5, %s61_s28  ;;  %p129_p11 = scmp.eq.s32.totalorder %s472_s23, 5 }
  0x16   : > { %p116_p9 = scmp.eq.s32.totalorder %s115_s6, 0  ;;  %p134_p12 = scmp.ne.s32.totalorder %s745_s13, %s741_s12 }
  0x17   : > { %p901_p13 = por %p129_p11, %p128_p10  ;;  %p135_p0 = scmp.eq.s32.totalorder %s473_s24, 5 }
  0x18   : > { %s899_s8 = scalar_select %p116_p9, %s749_s14, %s118_s7  }
  0x19   : > { %s1048_s9 = scalar_select %p901_p13, 1, 0 }
  0x1a   : > { %p524_p1 = scmp.lt.s32.totalorder %s781_s22, 6  ;;  %p906_p2 = por %p135_p0, %p134_p12 }
  0x1b   : > { %s162_s11 = sand.u32 1, %s761_s17   ;;  %s477_s27 = sshll.u32 %s773_s20, 6 }
  0x1c   : > { %s1049_s10 = scalar_select %p906_p2, 1, 0 }
  0x1d   : > { %s476_s15 = sshll.u32 %s162_s11, 5  ;;  %s915_s23 = scalar_lea.hbm %s1040_s1, %s477_s27 }
  0x1e   : > { %s166_s6 = scalar_lea.vmem [#allocation2], %s476_s15  ;;  %p921_p4 = pnand %p524_p1, %p877_p3 }
  0x1f   : > { %s172_s7 = sshll.u32 %s166_s6, 4  ;;  %s925_s26 = scalar_lea.sflag [#allocation3], %s162_s11  ;;  %s917_s7 = int_to_ptr.vmem [resolvable:$true] %s172_s7 }
  0x20   : > { %s629_s28 = scalar_lea.hbm %s915_s23, 512  ;;  %p631_p6 = pneg %p921_p4 }
  0x21   : > { %p630_p5 = scmp.ne.s32.totalorder %s915_s23, %s629_s28  ;;  %s634_s29 = scalar_lea.hbm %s1040_s1, 1536 }
  0x22   : > { %p635_p3 = scmp.lt.u32.totalorder %s915_s23, %s1040_s1  ;;  %p636_p10 = scmp.lt.u32.totalorder %s634_s29, %s629_s28 }
  0x23   : > { %p632_p7 = pnand %p631_p6, %p630_p5  ;;  %p638_p12 = scmp.lt.u32.totalorder %s629_s28, %s915_s23 }
  0x24   : > { %p637_p11 = por %p636_p10, %p635_p3 }
  0x25   : > { %p633_p9 = pneg %p632_p7 }
  0x26   : > { %p639_p0 = por %p638_p12, %p637_p11 }
  0x28   : > { %p640_p1 = pnand %p639_p0, %p633_p9 }
  0x2a   : > { %643 = shalt.err (!%p640_p1)
}
  0x2b   : > { %s644_s11 = scalar_lea.vmem %s917_s7, 512  ;;  %s783_s15 = smov [#allocation2]  }
  0x2c   : > { %p645_p5 = scmp.ne.s32.totalorder %s917_s7, %s644_s11  ;;  %s649_s27 = sshll.u32 %s783_s15, 4  ;;  %s650_s27 = int_to_ptr.vmem [resolvable:$false] %s649_s27 }
  0x2d   : > { %s651_s5 = scalar_lea.vmem %s650_s27, 1024  ;;  %p652_p13 = scmp.lt.s32.totalorder %s917_s7, %s650_s27 }
  0x2e   : > { %p647_p7 = pnand %p645_p5, %p631_p6  ;;  %p653_p3 = scmp.lt.s32.totalorder %s651_s5, %s644_s11 }
  0x30   : > { %p648_p2 = pneg %p647_p7  ;;  %p654_p10 = por %p653_p3, %p652_p13 }
  0x32   : > { %p655_p11 = pnand %p654_p10, %p648_p2 }
  0x34   : > { %658 = shalt.err (!%p655_p11)
}
  0x35   : > { %s784_s28 = smov 192   ;;  %s785_s29 = smov 64  }
  0x36   : > { %s786_s6 = smov 4   ;;  %p478_p6 = scmp.ge.s32.totalorder %s781_s22, 1 }
  0x37   : > { %519 = dma.hbm_to_vmem [thread:$0]  (!%p921_p4), %s915_s23, 512, %s917_s7, %s925_s26, %s784_s28, %s785_s29, %s786_s6  }
  0x38   : > { %p187_p9 = scmp.lt.s32.totalorder %s781_s22, 7 }
  0x3a   : > { %p188_p12 = pnand %p478_p6, %p187_p9 }
  0x3b   : > { %s193_s11 = sand.u32 (!%p188_p12), 1, %s757_s16  }
  0x3c   : > { %191 = sbr.rel (%p188_p12) target bundleno = 491 (0x1eb), region = 32  ;;  %s479_s15 = sshll.u32 (!%p188_p12), %s193_s11, 5 }
  0x3d   : > { %s194_s27 = scalar_lea.sflag (!%p188_p12), [#allocation3], %s193_s11  ;;  %s197_s5 = scalar_lea.vmem (!%p188_p12), [#allocation2], %s479_s15 }
  0x43   : > { %732 = dma.done.wait (%p887_p8), %s194_s27, 512  }
  0x44   : > { %734 = vsyncadd (%p887_p8), %s194_s27, 4294966784  ;;  %p228_p13 = scmp.lt.s32.totalorder %s769_s19, 1  ;;  %vm239_vm0 = vcmask 523264   ;;  %v621_v3 = vld [vmem:[%s197_s5] sm:$0xff]   ;;  %v787_v4 = vmov 0.0   ;;  %v622_v5 = vld [vmem:[%s197_s5 + $0x8] sm:$0xff]   ;;  %v337_v22 = vlaneseq }
  0x45   : > { %499 = vmatprep.subr.bf16.mxu0 %v787_v4  ;;  %vm788_vm1 = vmmov 0   ;;  %v623_v6 = vld [vmem:[%s197_s5 + $0x10] sm:$0xff]   ;;  %v624_v7 = vld [vmem:[%s197_s5 + $0x18] sm:$0xff]   ;;  %v789_v8 = vmov 0   ;;  %s489_s11 = sshll.u32 %s765_s18, 7  ;;  %s225_s15 = sand.u32 1, %s745_s13  }
  0x46   : > { %s229_s24 = scalar_select %p228_p13, %s769_s19, 1  ;;  %500 = vmatpush3.bf16.msra.mxu0 %v621_v3  ;;  %507 = vmatprep.mubr.msk.bf16.mxu0 %vm788_vm1, %v787_v4  ;;  %v338_v23 = vand.u32 127, %v337_v22  ;;  %v339_v24 = vstv %s489_s11 }
  0x47   : > { %501 = vmatprep.subr.bf16.mxu0 %v787_v4  ;;  %620 = vset.pattern.permute.xlu0 %v789_v8  ;;  %s511_s27 = smul.u32 3, %s769_s19  ;;  %s480_s5 = sshll.u32 %s225_s15, 3 }
  0x48   : > { %s481_s26 = sshll.u32 %s229_s24, 3  ;;  %v340_v28 = vadd.s32 %v339_v24, %v338_v23  ;;  %s227_s23 = scalar_lea.vmem [#allocation5], %s480_s5 }
  0x49   : > { %s231_s28 = scalar_lea.vmem %s1039_s0, %s481_s26  ;;  %s235_s6 = scalar_lea.vmem %s1041_s2, %s481_s26 }
  0x4a   : > { %v237_v0 = vld [vmem:[%s231_s28] sm:$0xff]  ;;  %502 = vmatpush3.bf16.msra.mxu0 %v622_v5  ;;  %s361_s24 = sadd.s32 %s765_s18, %s511_s27  ;;  %s365_s7 = sshll.u32 %s227_s23, 4  ;;  %s979_s7 = int_to_ptr.vmem [resolvable:$true] %s365_s7 }
  0x4b   : > { %v238_v1 = vmul.f32 %v237_v0, %v237_v0  ;;  %503 = vmatprep.subr.bf16.mxu0 %v787_v4  ;;  %v341_v9 = vld [vmem:[%s235_s6] sm:$0xff]  ;;  %s491_s26 = sshll.u32 %s361_s24, 7  ;;  %s350_s18 = scalar_lea.sflag [#allocation4], %s225_s15 }
  0x4c   : > { %s977_s4 = scalar_lea.hbm %s1042_s3, %s491_s26  ;;  %s659_s29 = scalar_lea.vmem %s979_s7, 128 }
  0x4d   : > { %v240_v2 = vsel %vm239_vm0, %v238_v1, 0.0  ;;  %p660_p8 = scmp.ne.s32.totalorder %s979_s7, %s659_s29  ;;  %p1051_p2 = scmp.ne.s32.totalorder %s1048_s9, 0 }
  0x4e   : > { %241 = vadd.xlane.f32.xlu0 %v240_v2  ;;  %504 = vmatpush3.bf16.msra.mxu0 %v623_v6  ;;  %s790_s6 = smov [#allocation5]  }
  0x4f   : > { %505 = vmatprep.subr.bf16.mxu0 %v787_v4  ;;  %p661_p4 = pnand %p660_p8, %p1051_p2  ;;  %s663_s11 = sshll.u32 %s790_s6, 4  ;;  %s664_s11 = int_to_ptr.vmem [resolvable:$false] %s663_s11 }
  0x50   : > { %s665_s27 = scalar_lea.vmem %s664_s11, 256  ;;  %p666_p1 = scmp.lt.s32.totalorder %s979_s7, %s664_s11 }
  0x51   : > { %p662_p0 = pneg %p661_p4  ;;  %p667_p5 = scmp.lt.s32.totalorder %s665_s27, %s659_s29 }
  0x52   : > { %506 = vmatpush3.bf16.msra.mxu0 %v624_v7 }
  0x53   : > { %p668_p7 = por %p667_p5, %p666_p1 }
  0x55   : > { %p669_p3 = pnand %p668_p7, %p662_p0 }
  0x64   : > { %343 = vperm.xlu0 %620, %v341_v9  }
  0xdb   : > { %v242_v10 = vpop.xlane.xlu0 %241 }
  0xdc   : > { %v243_v11 = vmax.f32 %v242_v10, 1e-24 }
  0xde   : > { %625 = vrsqrt.f32 %v243_v11 }
  0xe3   : > { %v344_v30 = vpop.permute.xlu0 %343 }
  0xe4   : > { %vm345_vm4 = vcmp.eq.s32.totalorder %v340_v28, %v344_v30 }
  0xe8   : > { %v626_v12 = vpop.eup %625 }
  0xe9   : > { %v245_v13 = vmul.f32 %v626_v12, %v237_v0 }
  0xeb   : > { %v246_v14 = vpack.c.bf16 %v245_v13, %v245_v13 }
  0xed   : > { %508 = vmatmul.mubr.msk.bf16.vlgmr.msra.gmra.mrb[0].mxu0 %vm239_vm0, %v246_v14 }
 0x1c0   : > { %v316_v15 = vpop.f32.mrb[0].mxu0 }
 0x1c1   : > { %v488_v16 = vclamps-f32 %v316_v15, 0.999999  ;;  %v509_v17 = vpop.f32.mrb[1].mxu0 }
 0x1c2   : > { %v319_v18 = vpop.f32.mrb[2].mxu0 }
 0x1c3   : > { %v324_v19 = vmul.f32 %v488_v16, %v488_v16  ;;  %v510_v20 = vpop.f32.mrb[3].mxu0  ;;  %v333_v32 = vmul.f32 0.921061, %v488_v16 }
 0x1c5   : > { %v325_v21 = vsub.f32 1.0, %v324_v19 }
 0x1c7   : > { %627 = vrsqrt.f32 %v325_v21  ;;  %vm328_vm2 = vcmp.eq.f32.partialorder %v325_v21, inf  ;;  %v331_v27 = vand.u32 2147483648, %v325_v21  ;;  %vm330_vm3 = vcmp.eq.f32.partialorder %v325_v21, 0.0 }
 0x1d1   : > { %v628_v25 = vpop.eup %627 }
 0x1d2   : > { %v327_v26 = vmul.f32 %v628_v25, %v325_v21 }
 0x1d4   : > { %v329_v29 = vsel %vm328_vm2, %v325_v21, %v327_v26 }
 0x1d5   : > { %v332_v31 = vsel %vm330_vm3, %v331_v27, %v329_v29 }
 0x1d6   : > { %v334_v33 = vmul.f32 0.38941833, %v332_v31 }
 0x1d8   : > { %v335_v34 = vsub.f32 %v333_v32, %v334_v33 }
 0x1da   : > { %v346_v35 = vsel %vm345_vm4, %v335_v34, %v488_v16 }
 0x1db   : > { %v347_v36 = vmul.f32 32.0, %v346_v35 }
 0x1dd   : > { %348 = vst [vmem:[%s227_s23] sm:$0xff] %v347_v36 }
 0x1de   : > { %672 = shalt.err (!%p669_p3)
}
 0x1df   : > { %s673_s15 = scalar_lea.hbm %s977_s4, 128  ;;  %s677_s26 = scalar_lea.hbm %s1042_s3, 768 }
 0x1e0   : > { %p674_p10 = scmp.ne.s32.totalorder %s977_s4, %s673_s15  ;;  %p678_p9 = scmp.lt.u32.totalorder %s977_s4, %s1042_s3 }
 0x1e1   : > { %p679_p12 = scmp.lt.u32.totalorder %s677_s26, %s673_s15  ;;  %p681_p8 = scmp.lt.u32.totalorder %s673_s15, %s977_s4 }
 0x1e2   : > { %p675_p11 = pnand %p674_p10, %p1051_p2 }
 0x1e3   : > { %p680_p13 = por %p679_p12, %p678_p9 }
 0x1e4   : > { %p676_p6 = pneg %p675_p11 }
 0x1e5   : > { %p682_p4 = por %p681_p8, %p680_p13 }
 0x1e7   : > { %p683_p0 = pnand %p682_p4, %p676_p6 }
 0x1e9   : > { %686 = shalt.err (!%p683_p0)
}
 0x1ea   : > { %514 = dma.vmem_to_hbm [thread:$0]  (%p1051_p2), %s979_s7, 128, %s977_s4, %s350_s18  }
 0x1eb PF: > { %p525_p1 = scmp.ge.s32.totalorder %s781_s22, 2  ;;  %s377_s28 = sand.u32 1, %s741_s12  }
 0x1ec   : > { %p1052_p5 = scmp.ne.s32.totalorder %s1049_s10, 0  ;;  %s378_s29 = scalar_lea.sflag [#allocation4], %s377_s28 }
 0x1ee   : > { %p521_p7 = pnand %p525_p1, %p1052_p5 }
 0x1f0   : > { %736 = dma.done.wait (!%p521_p7), %s378_s29, 128  }
 0x1f1   : > { %738 = vsyncadd (!%p521_p7), %s378_s29, 4294967168  ;;  %s19_s22 = sadd.s32 1, %s781_s22   ;;  %s1053_s9 = sld [smem:[#allocation8_spill]] }
 0x1f2   : > { %p16_p3 = scmp.ge.s32.totalorder %s19_s22, 8   ;;  %s1054_s12 = smov %s745_s13 }
 0x1f3   : > { %s1055_s13 = smov %s749_s14  ;;  %s1056_s14 = smov %s899_s8 }
 0x1f4   : > { %s1057_s15 = smov %s757_s16  ;;  %s1058_s16 = smov %s761_s17 }
 0x1f5   : > { %s1059_s17 = smov %s885_s30  ;;  %s1060_s18 = smov %s773_s20 }
 0x1f6   : > { %s1061_s19 = smov %s777_s21  ;;  %s1062_s20 = smov %s1065_s25 }
 0x1f7   : > { %s1063_s21 = smov %s1053_s9  ;;  %18 = sbr.rel (!%p16_p3) target bundleno = 9 (0x9), region = 83 }
 0x1fe   :  { %383 = vsyncpa [#allocation3], 1 }
 0x1ff   :  { %385 = vsyncpa [#allocation3 + $0x1], 1 }
 0x200   :  { %386 = vsyncpa [#allocation4], 1 }
 0x201   :  { %388 = vsyncpa [#allocation4 + $0x1], 1 }

</bundles_post_ra>
